<compile_context>
chip_gen: v5e
topology: v5e:2x2
jax: 0.10.0
libtpu: 0.0.40
codegen_flags: <defaults>
</compile_context>

<pallas_src>
import math
import functools

import jax
import jax.numpy as jnp
from jax.experimental import pallas as pl
from jax.experimental.pallas import tpu as pltpu


def _mha_kernel(k_ref, q_ref, v_ref,
                wq_ref, wk_ref, wv_ref, wo_ref, bo_ref,
                out_ref, *, heads, head_dim):
    # Native-dtype operands into the MXU; f32 accumulation via preferred_element_type.
    # The 1/sqrt(head_dim) score scale is already folded into Wq by the wrapper.
    q = jnp.dot(q_ref[...], wq_ref[...], preferred_element_type=jnp.float32)   # (bq, E)
    k = jnp.dot(k_ref[...], wk_ref[...], preferred_element_type=jnp.float32)   # (kl, E)
    v = jnp.dot(v_ref[...], wv_ref[...], preferred_element_type=jnp.float32)   # (vl, E)

    bq = q.shape[0]
    kl = k.shape[0]

    # (L, E) -> (heads, L, head_dim): one relayout instead of per-head lane slices.
    qh = jnp.transpose(q.reshape(bq, heads, head_dim), (1, 0, 2))
    kh = jnp.transpose(k.reshape(kl, heads, head_dim), (1, 0, 2))
    vh = jnp.transpose(v.reshape(kl, heads, head_dim), (1, 0, 2))

    # Batched scores over all heads at once; dot_general contracts the trailing
    # head_dim axes directly (no kh.T materialization).
    s = jnp.einsum('hqd,hkd->hqk', qh, kh, preferred_element_type=jnp.float32)
    # TODO(synk): optional attention mask (masked_fill(mask == 0, -1e20)) not wired in.

    # Numerically-stable softmax over the key axis; normalization via the EUP
    # approximate reciprocal rather than a VPU divide.
    s = s - jnp.max(s, axis=-1, keepdims=True)
    p = jnp.exp(s)
    p = p * pl.reciprocal(jnp.sum(p, axis=-1, keepdims=True), approx=True)
    # Dropout: identity in eval mode (matches nn.Dropout at inference time).

    # Batched weighted sum over V: (heads, bq, head_dim).
    o = jnp.einsum('hqk,hkd->hqd', p, vh, preferred_element_type=jnp.float32)
    # Back to the lane-contiguous (bq, E) slab expected by fc_output.
    concat = jnp.transpose(o, (1, 0, 2)).reshape(bq, heads * head_dim)

    # fc_output: x @ Wo + bo
    out = jnp.dot(concat.astype(wo_ref.dtype), wo_ref[...],
                  preferred_element_type=jnp.float32)
    out = out + bo_ref[...].astype(jnp.float32)
    out_ref[...] = out.astype(out_ref.dtype)


def _pick_q_block(q_len):
    """Largest convenient q block that evenly tiles q_len (multiple of 8 / 128)."""
    for cand in (512, 256, 128):
        if q_len % cand == 0:
            return cand
    return q_len   # small sequences: one full-extent block


def multi_head_attention(key, query, value, params, *, heads):
    """key/query/value: (B, L, E). params: dict of pre-transposed weights."""
    B, k_len, E = key.shape
    q_len = query.shape[1]
    v_len = value.shape[1]
    assert k_len == v_len, "attention-weighted sum requires k_len == v_len"
    assert E % heads == 0
    head_dim = E // heads

    # Fold the 1/sqrt(head_dim) score scale into Wq once on the host (free), so
    # the kernel never scales the (q, k) score tile.
    scale = jnp.asarray(1.0 / math.sqrt(head_dim), params["wq_t"].dtype)
    wq = params["wq_t"] * scale
    wk, wv = params["wk_t"], params["wv_t"]
    wo, bo = params["wo_t"], params["bo"]

    block_q = _pick_q_block(q_len)
    grid = (B, q_len // block_q)

    kernel = functools.partial(_mha_kernel, heads=heads, head_dim=head_dim)

    out = pl.pallas_call(
        kernel,
        out_shape=jax.ShapeDtypeStruct((B, q_len, E), query.dtype),
        grid_spec=pltpu.PrefetchScalarGridSpec(
            num_scalar_prefetch=0,
            grid=grid,
            in_specs=[
                pl.BlockSpec((None, k_len, E), lambda b, qi: (b, 0, 0)),     # key (full)
                pl.BlockSpec((None, block_q, E), lambda b, qi: (b, qi, 0)),  # query (q-tiled)
                pl.BlockSpec((None, v_len, E), lambda b, qi: (b, 0, 0)),     # value (full)
                pl.BlockSpec((E, E), lambda b, qi: (0, 0)),                  # Wq^T (pre-scaled)
                pl.BlockSpec((E, E), lambda b, qi: (0, 0)),                  # Wk^T
                pl.BlockSpec((E, E), lambda b, qi: (0, 0)),                  # Wv^T
                pl.BlockSpec((E, E), lambda b, qi: (0, 0)),                  # Wo^T
                pl.BlockSpec((1, E), lambda b, qi: (0, 0)),                  # bo
            ],
            out_specs=pl.BlockSpec((None, block_q, E), lambda b, qi: (b, qi, 0)),
        ),
        compiler_params=pltpu.CompilerParams(
            dimension_semantics=("parallel", "parallel"),
            vmem_limit_bytes=48 * 1024 * 1024,
        ),
    )(key, query, value, wq, wk, wv, wo, bo)
    return out


def _reference(key, query, value, params, *, heads):
    """Pure-JAX reference mirroring the PyTorch forward (eval mode, no mask)."""
    B, q_len, E = query.shape
    d = E // heads
    q = (query @ params["wq_t"]).reshape(B, q_len, heads, d)
    k = (key @ params["wk_t"]).reshape(B, key.shape[1], heads, d)
    v = (value @ params["wv_t"]).reshape(B, value.shape[1], heads, d)
    prod = jnp.einsum("bqhd,bkhd->bhqk", q, k) / math.sqrt(d)
    scores = jax.nn.softmax(prod, axis=-1)
    out = jnp.einsum("bhqv,bvhd->bqhd", scores, v).reshape(B, q_len, E)
    return out @ params["wo_t"] + params["bo"]


if __name__ == "__main__":
    # Small shapes consistent with the module.
    B, L, E, HEADS = 2, 8, 32, 4
    DTYPE = jnp.float32

    root = jax.random.PRNGKey(0)
    ks = jax.random.split(root, 8)

    # Deterministic synthetic parameters (PyTorch Linear stores W as (out, in);
    # here we directly build the transposed (in, out) matrices the kernel uses).
    init = 1.0 / math.sqrt(E)
    params = {
        "wq_t": jax.random.uniform(ks[0], (E, E), DTYPE, -init, init),
        "wk_t": jax.random.uniform(ks[1], (E, E), DTYPE, -init, init),
        "wv_t": jax.random.uniform(ks[2], (E, E), DTYPE, -init, init),
        "wo_t": jax.random.uniform(ks[3], (E, E), DTYPE, -init, init),
        "bo":   jax.random.uniform(ks[4], (1, E), DTYPE, -init, init),
    }

    key_in   = jax.random.normal(ks[5], (B, L, E), DTYPE)
    query_in = jax.random.normal(ks[6], (B, L, E), DTYPE)
    value_in = jax.random.normal(ks[7], (B, L, E), DTYPE)

    out = multi_head_attention(key_in, query_in, value_in, params, heads=HEADS)
    out = jax.block_until_ready(out)

    ref = _reference(key_in, query_in, value_in, params, heads=HEADS)
    assert out.shape == (B, L, E)
    # Tolerance accounts for the approximate (EUP) reciprocal in the softmax.
    assert jnp.allclose(out, ref, atol=1e-2, rtol=1e-2), "mismatch vs reference"

    print("KERNEL_OK")
</pallas_src>

<mosaic_0001>
module attributes {stable_mosaic.version = 11 : i64} {
  func.func @_mha_kernel(%arg0: i32, %arg1: i32, %arg2: memref<1x8x32xf32, #tpu.memory_space<vmem>>, %arg3: memref<1x8x32xf32, #tpu.memory_space<vmem>>, %arg4: memref<1x8x32xf32, #tpu.memory_space<vmem>>, %arg5: memref<32x32xf32, #tpu.memory_space<vmem>>, %arg6: memref<32x32xf32, #tpu.memory_space<vmem>>, %arg7: memref<32x32xf32, #tpu.memory_space<vmem>>, %arg8: memref<32x32xf32, #tpu.memory_space<vmem>>, %arg9: memref<1x32xf32, #tpu.memory_space<vmem>>, %arg10: memref<1x8x32xf32, #tpu.memory_space<vmem>>) attributes {dimension_semantics = [#tpu.dimension_semantics<parallel>, #tpu.dimension_semantics<parallel>], iteration_bounds = array<i64: 2, 1>, scalar_prefetch = 0 : i64, scratch_operands = 0 : i64, tpu.core_type = #tpu.core_type<tc>, window_params = [{transform_indices = @transform_0, window_bounds = array<i64: 1, 8, 32>}, {transform_indices = @transform_1, window_bounds = array<i64: 1, 8, 32>}, {transform_indices = @transform_2, window_bounds = array<i64: 1, 8, 32>}, {pipeline_mode = #tpu.pipeline_mode<synchronous>, transform_indices = @transform_3, window_bounds = array<i64: 32, 32>}, {pipeline_mode = #tpu.pipeline_mode<synchronous>, transform_indices = @transform_4, window_bounds = array<i64: 32, 32>}, {pipeline_mode = #tpu.pipeline_mode<synchronous>, transform_indices = @transform_5, window_bounds = array<i64: 32, 32>}, {pipeline_mode = #tpu.pipeline_mode<synchronous>, transform_indices = @transform_6, window_bounds = array<i64: 32, 32>}, {pipeline_mode = #tpu.pipeline_mode<synchronous>, transform_indices = @transform_7, window_bounds = array<i64: 1, 32>}, {transform_indices = @transform_8, window_bounds = array<i64: 1, 8, 32>}]} {
    %c0 = arith.constant 0 : index
    %c0_0 = arith.constant 0 : index
    %c0_1 = arith.constant 0 : index
    %0 = vector.load %arg3[%c0, %c0_0, %c0_1] : memref<1x8x32xf32, #tpu.memory_space<vmem>>, vector<1x8x32xf32>
    %1 = vector.shape_cast %0 : vector<1x8x32xf32> to vector<8x32xf32>
    %c0_2 = arith.constant 0 : index
    %c0_3 = arith.constant 0 : index
    %2 = vector.load %arg5[%c0_2, %c0_3] : memref<32x32xf32, #tpu.memory_space<vmem>>, vector<32x32xf32>
    %cst = arith.constant dense<0.000000e+00> : vector<8x32xf32>
    %3 = tpu.matmul %1, %2, %cst {dimension_numbers = #tpu.dot_dimension_numbers<[1], [0], [0], [1], [0, 0, 1, 1], [], []>} : vector<8x32xf32>, vector<32x32xf32>, vector<8x32xf32> -> vector<8x32xf32>
    %c0_4 = arith.constant 0 : index
    %c0_5 = arith.constant 0 : index
    %c0_6 = arith.constant 0 : index
    %4 = vector.load %arg2[%c0_4, %c0_5, %c0_6] : memref<1x8x32xf32, #tpu.memory_space<vmem>>, vector<1x8x32xf32>
    %5 = vector.shape_cast %4 : vector<1x8x32xf32> to vector<8x32xf32>
    %c0_7 = arith.constant 0 : index
    %c0_8 = arith.constant 0 : index
    %6 = vector.load %arg6[%c0_7, %c0_8] : memref<32x32xf32, #tpu.memory_space<vmem>>, vector<32x32xf32>
    %cst_9 = arith.constant dense<0.000000e+00> : vector<8x32xf32>
    %7 = tpu.matmul %5, %6, %cst_9 {dimension_numbers = #tpu.dot_dimension_numbers<[1], [0], [0], [1], [0, 0, 1, 1], [], []>} : vector<8x32xf32>, vector<32x32xf32>, vector<8x32xf32> -> vector<8x32xf32>
    %c0_10 = arith.constant 0 : index
    %c0_11 = arith.constant 0 : index
    %c0_12 = arith.constant 0 : index
    %8 = vector.load %arg4[%c0_10, %c0_11, %c0_12] : memref<1x8x32xf32, #tpu.memory_space<vmem>>, vector<1x8x32xf32>
    %9 = vector.shape_cast %8 : vector<1x8x32xf32> to vector<8x32xf32>
    %c0_13 = arith.constant 0 : index
    %c0_14 = arith.constant 0 : index
    %10 = vector.load %arg7[%c0_13, %c0_14] : memref<32x32xf32, #tpu.memory_space<vmem>>, vector<32x32xf32>
    %cst_15 = arith.constant dense<0.000000e+00> : vector<8x32xf32>
    %11 = tpu.matmul %9, %10, %cst_15 {dimension_numbers = #tpu.dot_dimension_numbers<[1], [0], [0], [1], [0, 0, 1, 1], [], []>} : vector<8x32xf32>, vector<32x32xf32>, vector<8x32xf32> -> vector<8x32xf32>
    %12 = vector.shape_cast %3 : vector<8x32xf32> to vector<8x4x8xf32>
    %13 = tpu.transpose %12, [1, 0, 2] : vector<8x4x8xf32> -> vector<4x8x8xf32>
    %14 = vector.shape_cast %7 : vector<8x32xf32> to vector<8x4x8xf32>
    %15 = tpu.transpose %14, [1, 0, 2] : vector<8x4x8xf32> -> vector<4x8x8xf32>
    %16 = vector.shape_cast %11 : vector<8x32xf32> to vector<8x4x8xf32>
    %17 = tpu.transpose %16, [1, 0, 2] : vector<8x4x8xf32> -> vector<4x8x8xf32>
    "tpu.trace_start"() <{level = 10 : i32, message = "hqd,hkd->hqk"}> : () -> ()
    %cst_16 = arith.constant dense<0.000000e+00> : vector<4x8x8xf32>
    %18 = tpu.matmul %13, %15, %cst_16 {dimension_numbers = #tpu.dot_dimension_numbers<[2], [2], [1], [1], [0, 0, 0, 1, 1, 1], [0], [0]>} : vector<4x8x8xf32>, vector<4x8x8xf32>, vector<4x8x8xf32> -> vector<4x8x8xf32>
    "tpu.trace_stop"() : () -> ()
    %cst_17 = arith.constant dense<0xFF800000> : vector<4x8xf32>
    %19 = vector.multi_reduction <maximumf>, %18, %cst_17 [2] : vector<4x8x8xf32> to vector<4x8xf32>
    %20 = vector.shape_cast %19 : vector<4x8xf32> to vector<4x8x1xf32>
    %21 = vector.broadcast %20 : vector<4x8x1xf32> to vector<4x8x8xf32>
    %22 = arith.subf %18, %21 : vector<4x8x8xf32>
    %23 = math.exp %22 : vector<4x8x8xf32>
    %cst_18 = arith.constant dense<0.000000e+00> : vector<4x8xf32>
    %24 = vector.multi_reduction <add>, %23, %cst_18 [2] : vector<4x8x8xf32> to vector<4x8xf32>
    %25 = vector.shape_cast %24 : vector<4x8xf32> to vector<4x8x1xf32>
    %26 = tpu.reciprocal %25 {approx = true} : vector<4x8x1xf32> -> vector<4x8x1xf32>
    %27 = vector.broadcast %26 : vector<4x8x1xf32> to vector<4x8x8xf32>
    %28 = arith.mulf %23, %27 : vector<4x8x8xf32>
    "tpu.trace_start"() <{level = 10 : i32, message = "hqk,hkd->hqd"}> : () -> ()
    %cst_19 = arith.constant dense<0.000000e+00> : vector<4x8x8xf32>
    %29 = tpu.matmul %28, %17, %cst_19 {dimension_numbers = #tpu.dot_dimension_numbers<[2], [1], [1], [2], [0, 0, 0, 1, 1, 2], [0], [0]>} : vector<4x8x8xf32>, vector<4x8x8xf32>, vector<4x8x8xf32> -> vector<4x8x8xf32>
    "tpu.trace_stop"() : () -> ()
    %30 = tpu.transpose %29, [1, 0, 2] : vector<4x8x8xf32> -> vector<8x4x8xf32>
    %31 = vector.shape_cast %30 : vector<8x4x8xf32> to vector<8x32xf32>
    %c0_20 = arith.constant 0 : index
    %c0_21 = arith.constant 0 : index
    %32 = vector.load %arg8[%c0_20, %c0_21] : memref<32x32xf32, #tpu.memory_space<vmem>>, vector<32x32xf32>
    %cst_22 = arith.constant dense<0.000000e+00> : vector<8x32xf32>
    %33 = tpu.matmul %31, %32, %cst_22 {dimension_numbers = #tpu.dot_dimension_numbers<[1], [0], [0], [1], [0, 0, 1, 1], [], []>} : vector<8x32xf32>, vector<32x32xf32>, vector<8x32xf32> -> vector<8x32xf32>
    %c0_23 = arith.constant 0 : index
    %c0_24 = arith.constant 0 : index
    %34 = vector.load %arg9[%c0_23, %c0_24] : memref<1x32xf32, #tpu.memory_space<vmem>>, vector<1x32xf32>
    %35 = vector.broadcast %34 : vector<1x32xf32> to vector<8x32xf32>
    %36 = arith.addf %33, %35 : vector<8x32xf32>
    %c0_25 = arith.constant 0 : index
    %c0_26 = arith.constant 0 : index
    %c0_27 = arith.constant 0 : index
    %37 = vector.load %arg10[%c0_25, %c0_26, %c0_27] : memref<1x8x32xf32, #tpu.memory_space<vmem>>, vector<1x8x32xf32>
    %38 = vector.shape_cast %37 : vector<1x8x32xf32> to vector<8x32xf32>
    %39 = vector.shape_cast %36 : vector<8x32xf32> to vector<1x8x32xf32>
    tpu.vector_store %arg10[%c0_25, %c0_26, %c0_27], %39 {strides = array<i32>} : memref<1x8x32xf32, #tpu.memory_space<vmem>>, vector<1x8x32xf32>,
    return
  }
  func.func @transform_0(%arg0: i32, %arg1: i32) -> (i32, i32, i32) {
    %c0_i32 = arith.constant 0 : i32
    %c0_i32_0 = arith.constant 0 : i32
    %c0_i32_1 = arith.constant 0 : i32
    return %arg0, %c0_i32, %c0_i32_0 : i32, i32, i32
  }
  func.func @transform_1(%arg0: i32, %arg1: i32) -> (i32, i32, i32) {
    %c0_i32 = arith.constant 0 : i32
    %c0_i32_0 = arith.constant 0 : i32
    return %arg0, %arg1, %c0_i32 : i32, i32, i32
  }
  func.func @transform_2(%arg0: i32, %arg1: i32) -> (i32, i32, i32) {
    %c0_i32 = arith.constant 0 : i32
    %c0_i32_0 = arith.constant 0 : i32
    %c0_i32_1 = arith.constant 0 : i32
    return %arg0, %c0_i32, %c0_i32_0 : i32, i32, i32
  }
  func.func @transform_3(%arg0: i32, %arg1: i32) -> (i32, i32) {
    %c0_i32 = arith.constant 0 : i32
    %c0_i32_0 = arith.constant 0 : i32
    %c0_i32_1 = arith.constant 0 : i32
    return %c0_i32, %c0_i32_0 : i32, i32
  }
  func.func @transform_4(%arg0: i32, %arg1: i32) -> (i32, i32) {
    %c0_i32 = arith.constant 0 : i32
    %c0_i32_0 = arith.constant 0 : i32
    %c0_i32_1 = arith.constant 0 : i32
    return %c0_i32, %c0_i32_0 : i32, i32
  }
  func.func @transform_5(%arg0: i32, %arg1: i32) -> (i32, i32) {
    %c0_i32 = arith.constant 0 : i32
    %c0_i32_0 = arith.constant 0 : i32
    %c0_i32_1 = arith.constant 0 : i32
    return %c0_i32, %c0_i32_0 : i32, i32
  }
  func.func @transform_6(%arg0: i32, %arg1: i32) -> (i32, i32) {
    %c0_i32 = arith.constant 0 : i32
    %c0_i32_0 = arith.constant 0 : i32
    %c0_i32_1 = arith.constant 0 : i32
    return %c0_i32, %c0_i32_0 : i32, i32
  }
  func.func @transform_7(%arg0: i32, %arg1: i32) -> (i32, i32) {
    %c0_i32 = arith.constant 0 : i32
    %c0_i32_0 = arith.constant 0 : i32
    %c0_i32_1 = arith.constant 0 : i32
    return %c0_i32, %c0_i32_0 : i32, i32
  }
  func.func @transform_8(%arg0: i32, %arg1: i32) -> (i32, i32, i32) {
    %c0_i32 = arith.constant 0 : i32
    %c0_i32_0 = arith.constant 0 : i32
    return %arg0, %arg1, %c0_i32 : i32, i32, i32
  }
}

</mosaic_0001>

<bundles_post_ra>
// kernel: tpu_custom_call.1
= control target key start
LH: loop header
LB: loop body
LE: loop exit
PB: predicated region body
PF: predicated region fallthrough
CT: control target
= control target key end

     0   :  { %s2495_s0 = inlined_call_operand.hbm [shape: f32[2,8,32], index: 0, kind: input, shape index: {}]   ;;  %s2496_s1 = inlined_call_operand.hbm [shape: f32[2,8,32], index: 1, kind: input, shape index: {}]   ;;  %s2497_s2 = inlined_call_operand.hbm [shape: f32[2,8,32], index: 2, kind: input, shape index: {}]   ;;  %s2498_s3 = inlined_call_operand.hbm [shape: f32[32,32], index: 3, kind: input, shape index: {}]   ;;  %s2499_s4 = inlined_call_operand.hbm [shape: f32[32,32], index: 4, kind: input, shape index: {}]   ;;  %s2500_s5 = inlined_call_operand.hbm [shape: f32[32,32], index: 5, kind: input, shape index: {}]   ;;  %s2501_s6 = inlined_call_operand.hbm [shape: f32[32,32], index: 6, kind: input, shape index: {}]   ;;  %s2502_s7 = inlined_call_operand.vmem [shape: f32[1,32], index: 7, kind: input, shape index: {}]   ;;  %s2503_s8 = inlined_call_operand.hbm [shape: f32[2,8,32], index: 8, kind: output, shape index: {}]  }
   0x1   :  { %2514 = sst [smem:[#allocation25_spill]] %s2495_s0 }
   0x2   :  { %2515 = sst [smem:[#allocation26_spill]] %s2496_s1 }
   0x3   :  { %2516 = sst [smem:[#allocation27_spill]] %s2498_s3 }
   0x4   :  { %2517 = sst [smem:[#allocation28_spill]] %s2499_s4 }
   0x5   :  { %2518 = sst [smem:[#allocation29_spill]] %s2500_s5 }
   0x6   :  { %2519 = sst [smem:[#allocation30_spill]] %s2501_s6 }
   0x7   :  { %13 = vsyncpa [#allocation3], 0 }
   0x8   :  { %15 = vsyncpa [#allocation3 + $0x1], 0 }
   0x9   :  { %16 = vsyncpa [#allocation6], 0 }
   0xa   :  { %18 = vsyncpa [#allocation6 + $0x1], 0 }
   0xb   :  { %19 = vsyncpa [#allocation9], 0 }
   0xc   :  { %20 = vsyncpa [#allocation12], 0 }
   0xd   :  { %21 = vsyncpa [#allocation4], 0 }
   0xe   :  { %23 = vsyncpa [#allocation4 + $0x1], 0  ;;  %s2053_s27 = smov 0   ;;  %s2055_s28 = smov 0  }
   0xf   :  { %s2057_s29 = smov 0   ;;  %s2059_s30 = smov 0  }
  0x10   :  { %s2061_s9 = smov 0   ;;  %s2063_s10 = smov 0  }
  0x11 LB: > { %2520 = sst [smem:[#allocation20_spill]] %s1988_s9  ;;  %s2084_s11 = sadd.s32 4294967295, %s1992_s10   ;;  %s1992_s10 = sphi %s2063_s10, %s29_s10   ;;  %s1988_s9 = sphi %s2061_s9, %s2545_s9   ;;  %s1984_s30 = sphi %s2059_s30, %s2544_s30   ;;  %s1980_s29 = sphi %s2057_s29, %s2548_s29   ;;  %s1976_s28 = sphi %s2055_s28, %s2547_s28   ;;  %s1972_s27 = sphi %s2053_s27, %s2546_s27  }
  0x12   : > { %2521 = sst [smem:[#allocation21_spill]] %s1992_s10  ;;  %p1507_p0 = scmp.ge.s32.totalorder %s1992_s10, 1 }
  0x13   : > { %p62_p1 = scmp.eq.s32.totalorder %s2084_s11, 0  ;;  %p259_p2 = scmp.lt.s32.totalorder %s1992_s10, 3 }
  0x14   : > { %s2522_s3 = sld [smem:[#allocation27_spill]]  ;;  %s1994_s16 = smov [#allocation8]  }
  0x15   : > { %p2092_p3 = pnand %p1507_p0, %p259_p2  ;;  %s272_s17 = sshll.u32 %s1994_s16, 4  ;;  %s273_s17 = int_to_ptr.vmem [resolvable:$true] %s272_s17 }
  0x16   : > { %p1512_p6 = scmp.ge.s32.totalorder %s1992_s10, 2  ;;  %s2525_s5 = sld [smem:[#allocation29_spill]] }
  0x17   : > { %p1572_p4 = pneg %p2092_p3  ;;  %s2504_s22 = smov 128  }
  0x18   : > { %s2506_s23 = smov 8   ;;  %s1997_s24 = smov [#allocation11]  }
  0x19   : > { %p2100_p5 = pnand %p1572_p4, %p62_p1  ;;  %s300_s25 = sshll.u32 %s1997_s24, 4  ;;  %s301_s25 = int_to_ptr.vmem [resolvable:$true] %s300_s25 }
  0x1a   : > { %s270_s14 = sshll.u32 %s2522_s3, 4  ;;  %s1506_s26 = sadd.s32 4294967294, %s1992_s10   ;;  %s271_s14 = int_to_ptr.hbm [resolvable:$true] %s270_s14 }
  0x1b   : > { %1575 = dma.hbm_to_vmem [thread:$0]  (!%p2100_p5), %s271_s14, 512, %s273_s17, [#allocation9], %s2504_s22, %s2504_s22, %s2506_s23  }
  0x1c   : > { %s298_s21 = sshll.u32 %s2525_s5, 4  ;;  %s41_s12 = sadd.s32 1, %s1988_s9  ;;  %s299_s21 = int_to_ptr.hbm [resolvable:$true] %s298_s21 }
  0x1d   : > { %1581 = dma.hbm_to_vmem [thread:$0]  (!%p2100_p5), %s299_s21, 512, %s301_s25, [#allocation12], %s2504_s22, %s2504_s22, %s2506_s23  }
  0x1e   : > { %p43_p7 = scmp.ge.s32.totalorder %s41_s12, 2  ;;  %s48_s13 = sadd.s32 1, %s1980_s29 }
  0x1f   : > { %p55_p8 = scmp.ne.s32.totalorder %s1980_s29, %s1976_s28  ;;  %p56_p9 = scmp.eq.s32.totalorder %s1992_s10, 0 }
  0x20   : > { %s2550_s12 = smov (%p43_p7, %s41_s12), 0  ;;  %p61_p11 = scmp.ne.s32.totalorder %s1976_s28, %s1972_s27 }
  0x21   : > { %2526 = sst [smem:[#allocation22_spill]] %s2550_s12  ;;  %p2126_p10 = por %p56_p9, %p55_p8 }
  0x22   : > { %s45_s16 = ssub.s32 %s1988_s9, %s2550_s12  ;;  %p246_p12 = scmp.eq.s32.totalorder %s2084_s11, 1 }
  0x23   : > { %p46_p13 = scmp.eq.s32.totalorder %s45_s16, 0  ;;  %p2137_p0 = por %p62_p1, %p61_p11 }
  0x24   : > { %p2141_p2 = por %p246_p12, %p55_p8  ;;  %p252_p4 = scmp.eq.s32.totalorder %s1506_s26, 1 }
  0x25   : > { %s2146_s20 = scalar_select %p46_p13, %s1980_s29, %s48_s13  }
  0x26   : > { %p2148_p7 = por %p252_p4, %p61_p11  ;;  %p1603_p9 = scmp.lt.s32.totalorder %s1992_s10, 2 }
  0x27   : > { %2530 = sst [smem:[#allocation23_spill]] %s2146_s20  ;;  %s2510_s24 = sand.u32 1, %s1980_s29  }
  0x28   : > { %s2531_s21 = scalar_select %p2148_p7, 1, 0 }
  0x29   : > { %s2155_s25 = sshll.u32 %s1988_s9, 3  ;;  %s2159_s16 = sshll.u32 %s2510_s24, 3 }
  0x2a   : > { %2532 = sst [smem:[#allocation24_spill]] %s2531_s21  ;;  %p2163_p8 = pnand %p1603_p9, %p2126_p10 }
  0x2b   : > { %s350_s26 = sand.u32 1, %s1992_s10   ;;  %s2534_s1 = sld [smem:[#allocation26_spill]] }
  0x2c   : > { %s354_s5 = scalar_lea.vmem [#allocation5], %s2159_s16  ;;  %s2535_s4 = sld [smem:[#allocation28_spill]] }
  0x2d   : > { %s363_s12 = sshll.u32 %s354_s5, 4  ;;  %s351_s21 = scalar_lea.sflag [#allocation6], %s350_s26  ;;  %s364_s12 = int_to_ptr.vmem [resolvable:$true] %s363_s12 }
  0x2e   : > { %s1998_s10 = smov [#allocation10]   ;;  %s2536_s6 = sld [smem:[#allocation30_spill]] }
  0x2f   : > { %s286_s23 = sshll.u32 %s1998_s10, 4  ;;  %s2537_s5 = smov 8   ;;  %s287_s23 = int_to_ptr.vmem [resolvable:$true] %s286_s23 }
  0x30   : > { %s2538_s24 = smov 128   ;;  %s1999_s26 = smov [#allocation13]  }
  0x31   : > { %s359_s3 = scalar_lea.hbm %s2534_s1, %s2155_s25  ;;  %s2539_s0 = sld [smem:[#allocation25_spill]] }
  0x32   : > { %s361_s9 = sshll.u32 %s359_s3, 4  ;;  %s284_s20 = sshll.u32 %s2535_s4, 4  ;;  %s362_s9 = int_to_ptr.hbm [resolvable:$true] %s361_s9  ;;  %s285_s20 = int_to_ptr.hbm [resolvable:$true] %s284_s20 }
  0x33   : > { %1591 = dma.hbm_to_vmem [thread:$0]  (!%p2163_p8), %s362_s9, 128, %s364_s12, %s351_s21  }
  0x34   : > { %s312_s3 = sshll.u32 %s2536_s6, 4  ;;  %s314_s9 = sshll.u32 %s1999_s26, 4  ;;  %s313_s3 = int_to_ptr.hbm [resolvable:$true] %s312_s3  ;;  %s315_s9 = int_to_ptr.vmem [resolvable:$true] %s314_s9 }
  0x35   : > { %1578 = dma.hbm_to_vmem [thread:$0]  (!%p2100_p5), %s285_s20, 512, %s287_s23, [#allocation9], %s2538_s24, %s2538_s24, %s2537_s5  }
  0x36   : > { %1584 = dma.hbm_to_vmem [thread:$0]  (!%p2100_p5), %s313_s3, 512, %s315_s9, [#allocation12], %s2538_s24, %s2538_s24, %s2537_s5  }
  0x37   : > { %s339_s10 = scalar_lea.hbm %s2539_s0, %s2155_s25  ;;  %s335_s13 = scalar_lea.vmem [#allocation2], %s2159_s16 }
  0x38   : > { %s341_s1 = sshll.u32 %s339_s10, 4  ;;  %s343_s4 = sshll.u32 %s335_s13, 4  ;;  %s342_s1 = int_to_ptr.hbm [resolvable:$true] %s341_s1  ;;  %s344_s4 = int_to_ptr.vmem [resolvable:$true] %s343_s4 }
  0x39   : > { %s2540_s6 = sand.u32 1, %s1980_s29   ;;  %s378_s12 = scalar_lea.hbm %s2497_s2, %s2155_s25 }
  0x3a   : > { %s332_s20 = scalar_lea.sflag [#allocation3], %s2540_s6  ;;  %s380_s14 = sshll.u32 %s378_s12, 4  ;;  %s381_s14 = int_to_ptr.hbm [resolvable:$true] %s380_s14 }
  0x3b   : > { %1588 = dma.hbm_to_vmem [thread:$0]  (!%p2163_p8), %s342_s1, 128, %s344_s4, %s332_s20  }
  0x3c   : > { %s374_s0 = scalar_lea.vmem [#allocation7], %s2159_s16  ;;  %391 = sbr.rel (%p2092_p3) target bundleno = 1165 (0x48d), region = 52 }
  0x3d   : > { %s382_s18 = sshll.u32 %s374_s0, 4  ;;  %s2210_s3 = sand.u32 (!%p2092_p3), 1, %s1976_s28   ;;  %s383_s18 = int_to_ptr.vmem [resolvable:$true] %s382_s18 }
  0x3e   : > { %1594 = dma.hbm_to_vmem [thread:$0]  (!%p2163_p8), %s381_s14, 128, %s383_s18, %s351_s21  }
  0x3f   : > { %s2213_s4 = sshll.u32 (!%p2092_p3), %s2210_s3, 3  ;;  %s394_s6 = scalar_lea.sflag (!%p2092_p3), [#allocation3], %s2210_s3 }
  0x40   : > { %s397_s25 = scalar_lea.vmem (!%p2092_p3), [#allocation2], %s2213_s4 }
  0x41   : > { %1951 = dma.done.wait (%p2137_p0), %s394_s6, 128  }
  0x42   : > { %1953 = vsyncadd (%p2137_p0), %s394_s6, 4294967168  ;;  %s403_s0 = sand.u32 1, %s2084_s11   ;;  %s407_s22 = scalar_lea.vmem [#allocation5], %s2213_s4 }
  0x43   : > { %s404_s15 = scalar_lea.sflag [#allocation6], %s403_s0 }
  0x44   : > { %1955 = dma.done.wait (%p2137_p0), %s404_s15, 256  }
  0x45   : > { %1957 = vsyncadd (%p2137_p0), %s404_s15, 4294967040  ;;  %s417_s21 = scalar_lea.vmem [#allocation7], %s2213_s4 }
  0x46   : > { %1959 = dma.done.wait (%p62_p1), [#allocation9], 1024  }
  0x47   : > { %1961 = vsyncadd (%p62_p1), [#allocation9], 4294966272 }
  0x48   : > { %1963 = dma.done.wait (%p62_p1), [#allocation12], 1024  }
  0x49   : > { %1965 = vsyncadd (%p62_p1), [#allocation12], 4294966272  ;;  %v485_v0 = vld [vmem:[#allocation8 + $0x18] sm:$0xff]  ;;  %v484_v2 = vld [vmem:[#allocation8 + $0x10] sm:$0xff]  ;;  %vm486_vm0 = vcmask 261120   ;;  %s2000_s11 = smov 104  }
  0x4a   : > { %v514_v1 = vld [vmem:[#allocation10 + $0x18] sm:$0xff]  ;;  %502 = vmatpush.msra.mxu0 %v485_v0  ;;  %v513_v3 = vld [vmem:[#allocation10 + $0x10] sm:$0xff]  ;;  %v483_v4 = vld [vmem:[#allocation8 + $0x8] sm:$0xff]  ;;  %s2001_s17 = smov 120   ;;  %s2002_s16 = smov 112   ;;  %vm577_vm1 = vcmask 1047556  }
  0x4b   : > { %530 = vmatpush.msra.mxu1 %v514_v1  ;;  %v512_v5 = vld [vmem:[#allocation10 + $0x8] sm:$0xff]  ;;  %v482_v6 = vld [vmem:[#allocation8] sm:$0xff]  ;;  %v510_v9 = vld [vmem:[%s397_s25] sm:$0xff]  ;;  %v2003_v13 = vmov 1983009808   ;;  %vm927_vm2 = vcmask 64512  }
  0x4c   : > { %503 = vmatpush.msra.mxu0 %v484_v2  ;;  %v511_v7 = vld [vmem:[#allocation10] sm:$0xff]  ;;  %v582_v14 = vunpack.c.l.s4 %v2003_v13  ;;  %v2004_v26 = vmov 1934713408   ;;  %s2005_s5 = smov 24   ;;  %s2006_s24 = smov 16   ;;  %vm1291_vm3 = vcmask 130048  }
  0x4d   : > { %531 = vmatpush.msra.mxu1 %v513_v3  ;;  %v481_v8 = vld [vmem:[%s407_s22] sm:$0xff]  ;;  %v606_v27 = vunpack.c.l.s4 %v2004_v26  ;;  %s2007_s9 = smov 8   ;;  %vm1293_vm4 = vcmask 195584   ;;  %s1545_s10 = sshll.u32 %s1984_s30, 3 }
  0x4e   : > { %504 = vmatpush.msra.mxu0 %v483_v4  ;;  %v2245_v22 = vunpack.c.0.s8 %v582_v14  ;;  %s1339_s20 = scalar_lea.hbm %s2503_s8, %s1545_s10  ;;  %s480_s12 = scalar_lea.vmem [#allocation14], %s2213_s4 }
  0x4f   : > { %532 = vmatpush.msra.mxu1 %v512_v5  ;;  %v2254_v35 = vunpack.c.0.s8 %v606_v27  ;;  %v542_v5 = vld [vmem:[#allocation11 + $0x18] sm:$0xff]  ;;  %s1341_s14 = sshll.u32 %s480_s12, 4  ;;  %s1343_s18 = sshll.u32 %s1339_s20, 4  ;;  %s1342_s14 = int_to_ptr.vmem [resolvable:$true] %s1341_s14  ;;  %s1344_s18 = int_to_ptr.hbm [resolvable:$true] %s1343_s18 }
  0x50   : > { %505 = vmatpush.msra.mxu0 %v482_v6  ;;  %v541_v6 = vld [vmem:[#allocation11 + $0x10] sm:$0xff]  ;;  %558 = vmatpush.msra.mxu2 %v542_v5  ;;  %s1328_s6 = scalar_lea.sflag [#allocation4], %s2210_s3  ;;  %s1912_s30 = sshra.s32 %s1344_s18, 4  ;;  %s1913_s30 = int_to_ptr.hbm [resolvable:$true] %s1912_s30 }
  0x51   : > { %533 = vmatpush.msra.mxu1 %v511_v7  ;;  %1528 = vmatmul.msk.f32.vlgmr.msra.gmra.mxu0 %vm486_vm0, %v481_v8  ;;  %s1914_s25 = scalar_lea.hbm %s1913_s30, 8  ;;  %s1918_s4 = scalar_lea.hbm %s2503_s8, 16 }
  0x52   : > { %1529 = vmatmul.msk.f32.vlgmr.msra.gmra.mxu1 %vm486_vm0, %v510_v9  ;;  %559 = vmatpush.msra.mxu2 %v541_v6  ;;  %p1915_p1 = scmp.ne.s32.totalorder %s1913_s30, %s1914_s25  ;;  %p1919_p10 = scmp.lt.s32.totalorder %s1913_s30, %s2503_s8 }
  0x53   : > { %p1920_p11 = scmp.lt.s32.totalorder %s1918_s4, %s1914_s25 }
  0x54   : > { %p1916_p3 = pnand %p1915_p1, %p2141_p2 }
  0x55   : > { %p1921_p12 = por %p1920_p11, %p1919_p10 }
  0x56   : > { %p1917_p5 = pneg %p1916_p3 }
  0x58   : > { %p1922_p13 = pnand %p1921_p12, %p1917_p5 }
  0xce   : > { %v507_v10 = vpop.f32.mrf.mxu0 }
  0xcf   : > { %v535_v11 = vpop.f32.mrf.mxu1  ;;  %570 = vrot.lane.b32.xlu2 %v507_v10, %s2002_s16  ;;  %v579_v20 = vrot.slane %v507_v10, 4 }
  0xd0   : > { %694 = vrot.lane.b32.xlu1 %v535_v11, %s2000_s11  ;;  %688 = vrot.lane.b32.xlu0 %v535_v11, %s2001_s17  ;;  %v699_v33 = vrot.slane %v535_v11, 4 }
  0xd7   : > { %573 = vrot.lane.b32.xlu2 %v507_v10, %s2000_s11 }
  0xd8   : > { %691 = vrot.lane.b32.xlu0 %v535_v11, %s2002_s16  ;;  %567 = vrot.lane.b32.xlu1 %v507_v10, %s2001_s17 }
 0x129   : > { %v571_v12 = vpop.permute.xlu2 %570 }
 0x12a   : > { %v576_v15 = vrot.slane %v571_v12, 4  ;;  %v580_v28 = vsel %vm577_vm1, %v571_v12, %v579_v20 }
 0x12b   : > { %v588_v34 = vperm.slane %v580_v28, %v2245_v22 }
 0x12c   : > { %v578_v23 = vsel %vm577_vm1, %v576_v15, %v507_v10  ;;  %v540_v15 = vld [vmem:[#allocation11 + $0x8] sm:$0xff] }
 0x12d   : > { %v584_v30 = vperm.slane %v578_v23, %v2245_v22  ;;  %v615_v53 = vrot.slane %v588_v34, 4  ;;  %560 = vmatpush.msra.mxu2 %v540_v15 }
 0x12f   : > { %v603_v45 = vrot.slane %v584_v30, 4 }
 0x131   : > { %v574_v24 = vpop.permute.xlu2 %573 }
 0x132   : > { %v589_v31 = vrot.slane %v574_v24, 4 }
 0x142   : > { %v695_v16 = vpop.permute.xlu1 %694  ;;  %v689_v17 = vpop.permute.xlu0 %688 }
 0x143   : > { %v709_v18 = vrot.slane %v695_v16, 4  ;;  %v711_v19 = vrot.slane %v689_v17, 4 }
 0x145   : > { %v712_v21 = vsel %vm577_vm1, %v695_v16, %v711_v19  ;;  %v710_v25 = vsel %vm577_vm1, %v709_v18, %v689_v17 }
 0x146   : > { %v720_v29 = vperm.slane %v712_v21, %v2245_v22  ;;  %v716_v32 = vperm.slane %v710_v25, %v2245_v22  ;;  %v539_v25 = vld [vmem:[#allocation11] sm:$0xff] }
 0x147   : > { %561 = vmatpush.msra.mxu2 %v539_v25 }
 0x148   : > { %v733_v42 = vrot.slane %v720_v29, 4  ;;  %v721_v46 = vrot.slane %v716_v32, 4 }
 0x14a   : > { %v692_v36 = vpop.permute.xlu0 %691  ;;  %v568_v37 = vpop.permute.xlu1 %567 }
 0x14b   : > { %v697_v38 = vrot.slane %v692_v36, 4  ;;  %v700_v39 = vsel %vm577_vm1, %v692_v36, %v699_v33  ;;  %v590_v40 = vsel %vm577_vm1, %v589_v31, %v568_v37  ;;  %v591_v41 = vrot.slane %v568_v37, 4 }
 0x14c   : > { %v708_v43 = vperm.slane %v700_v39, %v2245_v22  ;;  %v596_v44 = vperm.slane %v590_v40, %v2245_v22 }
 0x14d   : > { %v698_v47 = vsel %vm577_vm1, %v697_v38, %v535_v11  ;;  %v592_v48 = vsel %vm577_vm1, %v574_v24, %v591_v41 }
 0x14e   : > { %v704_v49 = vperm.slane %v698_v47, %v2245_v22  ;;  %v734_v50 = vsel %vm577_vm1, %v733_v42, %v708_v43  ;;  %v735_v51 = vrot.slane %v708_v43, 4  ;;  %v600_v52 = vperm.slane %v592_v48, %v2245_v22 }
 0x14f   : > { %v740_v54 = vperm.slane %v734_v50, %v2254_v35  ;;  %v601_v55 = vrot.slane %v596_v44, 4  ;;  %v604_v56 = vsel %vm577_vm1, %v596_v44, %v603_v45 }
 0x150   : > { %v722_v57 = vsel %vm577_vm1, %v721_v46, %v704_v49  ;;  %v723_v58 = vrot.slane %v704_v49, 4  ;;  %v736_v59 = vsel %vm577_vm1, %v720_v29, %v735_v51  ;;  %v612_v60 = vperm.slane %v604_v56, %v2254_v35 }
 0x151   : > { %v728_v61 = vperm.slane %v722_v57, %v2254_v35  ;;  %v744_v62 = vperm.slane %v736_v59, %v2254_v35  ;;  %v749_v63 = vrot.slane %v740_v54, 4  ;;  %v602_v0 = vsel %vm577_vm1, %v601_v55, %v584_v30  ;;  %v538_v30 = vld [vmem:[%s417_s21] sm:$0xff] }
 0x152   : > { %v724_v1 = vsel %vm577_vm1, %v716_v32, %v723_v58  ;;  %v608_v2 = vperm.slane %v602_v0, %v2254_v35  ;;  %v613_v3 = vrot.slane %v600_v52, 4  ;;  %v616_v4 = vsel %vm577_vm1, %v600_v52, %v615_v53  ;;  %1530 = vmatmul.msk.f32.vlgmr.msra.gmra.mxu2 %vm486_vm0, %v538_v30 }
 0x153   : > { %v732_v7 = vperm.slane %v724_v1, %v2254_v35  ;;  %v745_v8 = vrot.slane %v728_v61, 4  ;;  %v750_v9 = vsel %vm577_vm1, 0.0, %v749_v63  ;;  %v751_v10 = vrot.slane %v744_v62, 4 }
 0x154   : > { %v614_v11 = vsel %vm577_vm1, %v613_v3, %v588_v34  ;;  %v624_v12 = vperm.slane %v616_v4, %v2254_v35  ;;  %v625_v13 = vrot.slane %v608_v2, 4  ;;  %v627_v14 = vrot.slane %v612_v60, 4 }
 0x155   : > { %v747_v16 = vrot.slane %v732_v7, 4  ;;  %v752_v17 = vsel %vm577_vm1, 0.0, %v751_v10  ;;  %v764_v18 = vsel %vm577_vm1, %v751_v10, %v740_v54  ;;  %v620_v19 = vperm.slane %v614_v11, %v2254_v35 }
 0x156   : > { %v768_v20 = vperm.slane %v764_v18, %v2245_v22  ;;  %v769_v21 = vrot.slane %v752_v17, 4  ;;  %v626_v23 = vsel %vm577_vm1, 0.0, %v625_v13  ;;  %v628_v24 = vsel %vm577_vm1, 0.0, %v627_v14 }
 0x157   : > { %v748_v26 = vsel %vm577_vm1, 0.0, %v747_v16  ;;  %v629_v27 = vrot.slane %v620_v19, 4  ;;  %v631_v28 = vrot.slane %v624_v12, 4  ;;  %v633_v29 = vsel %vm577_vm1, %v627_v14, %v608_v2 }
 0x158   : > { %v770_v31 = vsel %vm577_vm1, %v769_v21, %v750_v9  ;;  %v637_v32 = vperm.slane %v633_v29, %v2245_v22  ;;  %v638_v33 = vrot.slane %v628_v24, 4  ;;  %v746_v34 = vsel %vm577_vm1, 0.0, %v745_v8 }
 0x159   : > { %v632_v36 = vsel %vm577_vm1, 0.0, %v631_v28  ;;  %v644_v37 = vsel %vm577_vm1, %v631_v28, %v620_v19  ;;  %v753_v38 = vsel %vm577_vm1, %v747_v16, %v728_v61  ;;  %v758_v39 = vrot.slane %v748_v26, 4 }
 0x15a   : > { %v649_v40 = vrot.slane %v632_v36, 4  ;;  %v757_v41 = vperm.slane %v753_v38, %v2245_v22  ;;  %v774_v42 = vperm.slane %v770_v31, %v2245_v22  ;;  %v789_v43 = vrot.slane %v768_v20, 4 }
 0x15b   : > { %v759_v44 = vsel %vm577_vm1, %v758_v39, %v746_v34  ;;  %v630_v45 = vsel %vm577_vm1, 0.0, %v629_v27  ;;  %v639_v46 = vsel %vm577_vm1, %v638_v33, %v626_v23  ;;  %v648_v47 = vperm.slane %v644_v37, %v2245_v22 }
 0x15c   : > { %v763_v48 = vperm.slane %v759_v44, %v2245_v22  ;;  %v777_v49 = vrot.slane %v757_v41, 4  ;;  %v790_v50 = vsel %vm577_vm1, %v774_v42, %v789_v43  ;;  %v787_v51 = vrot.slane %v774_v42, 4 }
 0x15d   : > { %v798_v52 = vperm.slane %v790_v50, %v2254_v35  ;;  %v643_v53 = vperm.slane %v639_v46, %v2245_v22  ;;  %v650_v54 = vsel %vm577_vm1, %v649_v40, %v630_v45  ;;  %v657_v55 = vrot.slane %v637_v32, 4 }
 0x15e   : > { %v778_v56 = vsel %vm577_vm1, %v763_v48, %v777_v49  ;;  %v775_v57 = vrot.slane %v763_v48, 4  ;;  %v788_v58 = vsel %vm577_vm1, %v787_v51, %v768_v20  ;;  %v654_v59 = vperm.slane %v650_v54, %v2245_v22 }
 0x15f   : > { %v786_v60 = vperm.slane %v778_v56, %v2254_v35  ;;  %v803_v61 = vrot.slane %v798_v52, 4  ;;  %v794_v62 = vperm.slane %v788_v58, %v2254_v35  ;;  %v658_v63 = vsel %vm577_vm1, %v643_v53, %v657_v55 }
 0x160   : > { %v776_v0 = vsel %vm577_vm1, %v775_v57, %v757_v41  ;;  %v666_v1 = vperm.slane %v658_v63, %v2254_v35  ;;  %v669_v2 = vrot.slane %v648_v47, 4  ;;  %v655_v3 = vrot.slane %v643_v53, 4 }
 0x161   : > { %v804_v4 = vsel %vm577_vm1, %v803_v61, %v786_v60  ;;  %v782_v5 = vperm.slane %v776_v0, %v2254_v35  ;;  %v799_v6 = vrot.slane %v794_v62, 4  ;;  %v805_v7 = vrot.slane %v786_v60, 4 }
 0x162   : > { %1535 = vmatpush.xpose.msk.msrb.mxu0 %vm927_vm2, %v804_v4  ;;  %v670_v8 = vsel %vm577_vm1, %v654_v59, %v669_v2  ;;  %v667_v9 = vrot.slane %v654_v59, 4  ;;  %v685_v10 = vrot.slane %v666_v1, 4  ;;  %v656_v15 = vsel %vm577_vm1, %v655_v3, %v637_v32 }
 0x163   : > { %v800_v11 = vsel %vm577_vm1, %v799_v6, %v782_v5  ;;  %v806_v12 = vsel %vm577_vm1, %v798_v52, %v805_v7  ;;  %v678_v13 = vperm.slane %v670_v8, %v2254_v35  ;;  %v801_v14 = vrot.slane %v782_v5, 4 }
 0x164   : > { %1531 = vmatpush.xpose.msk.msra.mxu3 %vm927_vm2, %v800_v11  ;;  %1537 = vmatpush.xpose.msk.msrb.mxu1 %vm927_vm2, %v806_v12  ;;  %v668_v16 = vsel %vm577_vm1, %v667_v9, %v648_v47  ;;  %v662_v23 = vperm.slane %v656_v15, %v2254_v35 }
 0x165   : > { %v683_v17 = vrot.slane %v678_v13, 4  ;;  %v802_v18 = vsel %vm577_vm1, %v794_v62, %v801_v14  ;;  %v674_v19 = vperm.slane %v668_v16, %v2254_v35  ;;  %v686_v20 = vsel %vm577_vm1, %v678_v13, %v685_v10 }
 0x166   : > { %v681_v26 = vrot.slane %v662_v23, 4 }
 0x167   : > { %v684_v21 = vsel %vm577_vm1, %v683_v17, %v666_v1  ;;  %v679_v24 = vrot.slane %v674_v19, 4  ;;  %1538 = vmatmul.msk.f32.vlgmr.msrb.gmra.mxu1 %vm927_vm2, %v686_v20 }
 0x168   : > { %1533 = vmatpush.xpose.msk.msrb.mxu3 %vm927_vm2, %v802_v18  ;;  %1536 = vmatmul.msk.f32.vlgmr.msrb.gmra.mxu0 %vm927_vm2, %v684_v21  ;;  %v682_v27 = vsel %vm577_vm1, %v674_v19, %v681_v26 }
 0x169   : > { %v680_v25 = vsel %vm577_vm1, %v679_v24, %v662_v23 }
 0x16a   : > { %1532 = vmatmul.msk.f32.vlgmr.msra.gmra.mxu3 %vm927_vm2, %v680_v25 }
 0x172   : > { %1534 = vmatmul.msk.f32.vlgmr.msrb.gmra.mxu3 %vm927_vm2, %v682_v27 }
 0x1d5   : > { %v563_v37 = vpop.f32.mrf.mxu2 }
 0x1d6   : > { %v819_v2 = vrot.slane %v563_v37, 4 }
 0x1e4   : > { %v1029_v30 = vpop.f32.mrf.mxu1 }
 0x1e5   : > { %v1003_v28 = vpop.f32.mrf.mxu0  ;;  %v1041_v32 = vsel %vm927_vm2, %v1029_v30, -inf }
 0x1e6   : > { %v1038_v29 = vsel %vm927_vm2, %v1003_v28, -inf }
 0x1e7   : > { %1039 = vmax.xlane.f32.xlu2 %v1038_v29 }
 0x1ed   : > { %v951_v31 = vpop.f32.mrf.mxu3 }
 0x1ee   : > { %v1032_v33 = vsel %vm927_vm2, %v951_v31, -inf }
 0x1ef   : > { %1042 = vmax.xlane.f32.xlu2 %v1041_v32  ;;  %1033 = vmax.xlane.f32.xlu0 %v1032_v33 }
 0x1f5   : > { %v977_v34 = vpop.f32.mrf.mxu3 }
 0x1f6   : > { %v1035_v36 = vsel %vm927_vm2, %v977_v34, -inf }
 0x1f7   : > { %1036 = vmax.xlane.f32.xlu1 %v1035_v36 }
 0x203   : > { %808 = vrot.lane.b32.xlu0 %v563_v37, %s2001_s17 }
 0x207   : > { %814 = vrot.lane.b32.xlu2 %v563_v37, %s2000_s11 }
 0x210   : > { %811 = vrot.lane.b32.xlu1 %v563_v37, %s2002_s16 }
 0x25a   : > { %v1040_v38 = vpop.xlane.xlu2 %1039 }
 0x25b   : > { %v1046_v39 = vsub.f32 %v1003_v28, %v1040_v38 }
 0x25d   : > { %v1052_v40 = vmul.f32 1.442695, %v1046_v39 }
 0x25f   : > { %1672 = vpow2.f32 %v1052_v40 }
 0x262   : > { %v1034_v41 = vpop.xlane.xlu0 %1033  ;;  %v1043_v42 = vpop.xlane.xlu2 %1042 }
 0x263   : > { %v1044_v43 = vsub.f32 %v951_v31, %v1034_v41  ;;  %v1047_v46 = vsub.f32 %v1029_v30, %v1043_v42 }
 0x265   : > { %v2346_v44 = vpop.eup %1672  ;;  %v1048_v45 = vmul.f32 1.442695, %v1044_v43  ;;  %v1054_v48 = vmul.f32 1.442695, %v1047_v46 }
 0x266   : > { %v1062_v47 = vsel %vm927_vm2, %v2346_v44, 0.0 }
 0x267   : > { %1063 = vadd.xlane.f32.xlu2 %v1062_v47  ;;  %1674 = vpow2.f32 %v1048_v45 }
 0x268   : > { %1676 = vpow2.f32 %v1054_v48 }
 0x26a   : > { %v1037_v49 = vpop.xlane.xlu1 %1036  ;;  %v815_v58 = vpop.permute.xlu2 %814 }
 0x26b   : > { %v1045_v50 = vsub.f32 %v977_v34, %v1037_v49  ;;  %v829_v61 = vrot.slane %v815_v58, 4 }
 0x26d   : > { %v1050_v51 = vmul.f32 1.442695, %v1045_v50  ;;  %v2350_v52 = vpop.eup %1674 }
 0x26e   : > { %v1056_v53 = vsel %vm927_vm2, %v2350_v52, 0.0  ;;  %v2354_v54 = vpop.eup %1676 }
 0x26f   : > { %1678 = vpow2.f32 %v1050_v51  ;;  %1057 = vadd.xlane.f32.xlu0 %v1056_v53  ;;  %v1065_v59 = vsel %vm927_vm2, %v2354_v54, 0.0 }
 0x275   : > { %v2356_v55 = vpop.eup %1678  ;;  %v809_v56 = vpop.permute.xlu0 %808 }
 0x276   : > { %v1059_v57 = vsel %vm927_vm2, %v2356_v55, 0.0  ;;  %v831_v60 = vrot.slane %v809_v56, 4  ;;  %v830_v63 = vsel %vm577_vm1, %v829_v61, %v809_v56 }
 0x277   : > { %1060 = vadd.xlane.f32.xlu1 %v1059_v57  ;;  %1066 = vadd.xlane.f32.xlu0 %v1065_v59  ;;  %v836_v1 = vperm.slane %v830_v63, %v2245_v22 }
 0x278   : > { %v832_v62 = vsel %vm577_vm1, %v815_v58, %v831_v60 }
 0x279   : > { %v840_v0 = vperm.slane %v832_v62, %v2245_v22  ;;  %v841_v7 = vrot.slane %v836_v1, 4 }
 0x27b   : > { %v853_v3 = vrot.slane %v840_v0, 4 }
 0x282   : > { %v812_v4 = vpop.permute.xlu1 %811 }
 0x283   : > { %v817_v5 = vrot.slane %v812_v4, 4  ;;  %v820_v6 = vsel %vm577_vm1, %v812_v4, %v819_v2 }
 0x284   : > { %v828_v8 = vperm.slane %v820_v6, %v2245_v22 }
 0x285   : > { %v818_v9 = vsel %vm577_vm1, %v817_v5, %v563_v37 }
 0x286   : > { %v824_v10 = vperm.slane %v818_v9, %v2245_v22  ;;  %v854_v11 = vsel %vm577_vm1, %v853_v3, %v828_v8  ;;  %v855_v12 = vrot.slane %v828_v8, 4 }
 0x287   : > { %v860_v13 = vperm.slane %v854_v11, %v2254_v35 }
 0x288   : > { %v842_v14 = vsel %vm577_vm1, %v841_v7, %v824_v10  ;;  %v843_v15 = vrot.slane %v824_v10, 4  ;;  %v856_v16 = vsel %vm577_vm1, %v840_v0, %v855_v12 }
 0x289   : > { %v848_v17 = vperm.slane %v842_v14, %v2254_v35  ;;  %v864_v18 = vperm.slane %v856_v16, %v2254_v35  ;;  %v869_v21 = vrot.slane %v860_v13, 4 }
 0x28a   : > { %v844_v19 = vsel %vm577_vm1, %v836_v1, %v843_v15 }
 0x28b   : > { %v852_v20 = vperm.slane %v844_v19, %v2254_v35  ;;  %v871_v23 = vrot.slane %v864_v18, 4  ;;  %v865_v24 = vrot.slane %v848_v17, 4  ;;  %v870_v31 = vsel %vm577_vm1, 0.0, %v869_v21 }
 0x28d   : > { %v867_v25 = vrot.slane %v852_v20, 4  ;;  %v872_v26 = vsel %vm577_vm1, 0.0, %v871_v23  ;;  %v884_v27 = vsel %vm577_vm1, %v871_v23, %v860_v13  ;;  %v866_v38 = vsel %vm577_vm1, 0.0, %v865_v24 }
 0x28e   : > { %v888_v28 = vperm.slane %v884_v27, %v2245_v22  ;;  %v889_v29 = vrot.slane %v872_v26, 4 }
 0x28f   : > { %v868_v30 = vsel %vm577_vm1, 0.0, %v867_v25  ;;  %v873_v32 = vsel %vm577_vm1, %v867_v25, %v848_v17 }
 0x290   : > { %v878_v33 = vrot.slane %v868_v30, 4  ;;  %v890_v34 = vsel %vm577_vm1, %v889_v29, %v870_v31  ;;  %v877_v36 = vperm.slane %v873_v32, %v2245_v22  ;;  %v909_v37 = vrot.slane %v888_v28, 4 }
 0x291   : > { %v894_v39 = vperm.slane %v890_v34, %v2245_v22 }
 0x292   : > { %v879_v40 = vsel %vm577_vm1, %v878_v33, %v866_v38  ;;  %v897_v41 = vrot.slane %v877_v36, 4 }
 0x293   : > { %v883_v42 = vperm.slane %v879_v40, %v2245_v22  ;;  %v910_v43 = vsel %vm577_vm1, %v894_v39, %v909_v37  ;;  %v907_v45 = vrot.slane %v894_v39, 4 }
 0x294   : > { %v918_v46 = vperm.slane %v910_v43, %v2254_v35 }
 0x295   : > { %v898_v47 = vsel %vm577_vm1, %v883_v42, %v897_v41  ;;  %v895_v48 = vrot.slane %v883_v42, 4  ;;  %v908_v49 = vsel %vm577_vm1, %v907_v45, %v888_v28 }
 0x296   : > { %v906_v50 = vperm.slane %v898_v47, %v2254_v35  ;;  %v923_v51 = vrot.slane %v918_v46, 4  ;;  %v914_v53 = vperm.slane %v908_v49, %v2254_v35 }
 0x297   : > { %v896_v56 = vsel %vm577_vm1, %v895_v48, %v877_v36 }
 0x298   : > { %v924_v57 = vsel %vm577_vm1, %v923_v51, %v906_v50  ;;  %v902_v58 = vperm.slane %v896_v56, %v2254_v35  ;;  %v919_v59 = vrot.slane %v914_v53, 4  ;;  %v925_v60 = vrot.slane %v906_v50, 4 }
 0x299   : > { %1140 = vmatpush.msra.mxu0 %v924_v57 }
 0x29a   : > { %v920_v61 = vsel %vm577_vm1, %v919_v59, %v902_v58  ;;  %v921_v62 = vrot.slane %v902_v58, 4  ;;  %v926_v63 = vsel %vm577_vm1, %v918_v46, %v925_v60 }
 0x29b   : > { %1094 = vmatpush.msrb.mxu2 %v920_v61  ;;  %1163 = vmatpush.msra.mxu1 %v926_v63 }
 0x29c   : > { %v922_v0 = vsel %vm577_vm1, %v914_v53, %v921_v62 }
 0x29d   : > { %1117 = vmatpush.msra.mxu3 %v922_v0 }
 0x2da   : > { %v1064_v1 = vpop.xlane.xlu2 %1063 }
 0x2db   : > { %1680 = vrcp.f32 %v1064_v1 }
 0x2e1   : > { %v1681_v2 = vpop.eup %1680 }
 0x2e2   : > { %v1074_v3 = vmul.f32 %v1681_v2, %v2346_v44  ;;  %v1058_v4 = vpop.xlane.xlu0 %1057 }
 0x2e3   : > { %1682 = vrcp.f32 %v1058_v4 }
 0x2e4   : > { %1541 = vmatmul.msk.f32.vlgmr.msra.gmra.mxu0 %vm927_vm2, %v1074_v3 }
 0x2e9   : > { %v1683_v5 = vpop.eup %1682 }
 0x2ea   : > { %v1061_v6 = vpop.xlane.xlu1 %1060  ;;  %v1067_v7 = vpop.xlane.xlu0 %1066  ;;  %v1072_v8 = vmul.f32 %v1683_v5, %v2350_v52 }
 0x2eb   : > { %1684 = vrcp.f32 %v1061_v6 }
 0x2ec   : > { %1686 = vrcp.f32 %v1067_v7  ;;  %1539 = vmatmul.msk.f32.vlgmr.msrb.gmra.mxu2 %vm927_vm2, %v1072_v8 }
 0x2f1   : > { %v1685_v9 = vpop.eup %1684 }
 0x2f2   : > { %v1687_v10 = vpop.eup %1686  ;;  %v1073_v11 = vmul.f32 %v1685_v9, %v2356_v55 }
 0x2f3   : > { %v1075_v12 = vmul.f32 %v1687_v10, %v2354_v54 }
 0x2f4   : > { %1540 = vmatmul.msk.f32.vlgmr.msra.gmra.mxu3 %vm927_vm2, %v1073_v11 }
 0x2f5   : > { %1542 = vmatmul.msk.f32.vlgmr.msra.gmra.mxu1 %vm927_vm2, %v1075_v12 }
 0x361   : > { %v1142_v44 = vpop.f32.mrf.mxu0 }
 0x362   : > { %v1168_v13 = vrot.slane %v1142_v44, 4 }
 0x36f   : > { %v1096_v14 = vpop.f32.mrf.mxu2 }
 0x370   : > { %v1170_v15 = vrot.slane %v1096_v14, 4  ;;  %v1169_v16 = vsel %vm577_vm1, %v1168_v13, %v1096_v14 }
 0x371   : > { %v1175_v18 = vperm.slane %v1169_v16, %v2245_v22  ;;  %v1297_v16 = vld [vmem:[#allocation13 + $0x10] sm:$0xff] }
 0x372   : > { %v1165_v52 = vpop.f32.mrf.mxu1  ;;  %v1171_v17 = vsel %vm577_vm1, %v1142_v44, %v1170_v15  ;;  %v1298_v15 = vld [vmem:[#allocation13 + $0x18] sm:$0xff] }
 0x373   : > { %v1180_v19 = vrot.slane %v1165_v52, 4  ;;  %v1179_v55 = vperm.slane %v1171_v17, %v2245_v22  ;;  %v1194_v23 = vrot.slane %v1175_v18, 4  ;;  %1318 = vmatpush.msra.mxu2 %v1298_v15 }
 0x375   : > { %v1206_v26 = vrot.slane %v1179_v55, 4  ;;  %1319 = vmatpush.msra.mxu2 %v1297_v16 }
 0x377   : > { %v1119_v20 = vpop.f32.mrf.mxu3 }
 0x378   : > { %v1181_v54 = vsel %vm577_vm1, %v1180_v19, %v1119_v20  ;;  %v1182_v21 = vrot.slane %v1119_v20, 4 }
 0x379   : > { %v1187_v24 = vperm.slane %v1181_v54, %v2245_v22 }
 0x37a   : > { %v1183_v25 = vsel %vm577_vm1, %v1165_v52, %v1182_v21  ;;  %v1296_v52 = vld [vmem:[#allocation13 + $0x8] sm:$0xff]  ;;  %v1671_v21 = vld [vmem:[%s2502_s7] ss:$0 sm:$0xff] }
 0x37b   : > { %v1191_v27 = vperm.slane %v1183_v25, %v2245_v22  ;;  %v1192_v28 = vrot.slane %v1187_v24, 4  ;;  %v1195_v29 = vsel %vm577_vm1, %v1187_v24, %v1194_v23  ;;  %1320 = vmatpush.msra.mxu2 %v1296_v52 }
 0x37c   : > { %v1203_v30 = vperm.slane %v1195_v29, %v2254_v35 }
 0x37d   : > { %v1193_v31 = vsel %vm577_vm1, %v1192_v28, %v1175_v18  ;;  %v1204_v32 = vrot.slane %v1191_v27, 4  ;;  %v1207_v33 = vsel %vm577_vm1, %v1191_v27, %v1206_v26 }
 0x37e   : > { %v1199_v34 = vperm.slane %v1193_v31, %v2254_v35  ;;  %v1215_v36 = vperm.slane %v1207_v33, %v2254_v35  ;;  %v1218_v37 = vrot.slane %v1203_v30, 4 }
 0x37f   : > { %v1205_v38 = vsel %vm577_vm1, %v1204_v32, %v1179_v55 }
 0x380   : > { %v1211_v39 = vperm.slane %v1205_v38, %v2254_v35  ;;  %v1216_v40 = vrot.slane %v1199_v34, 4  ;;  %v1219_v41 = vsel %vm577_vm1, 0.0, %v1218_v37  ;;  %v1222_v42 = vrot.slane %v1215_v36, 4 }
 0x381   : > { %v1224_v43 = vsel %vm577_vm1, %v1218_v37, %v1199_v34  ;;  %v1229_v45 = vrot.slane %v1219_v41, 4 }
 0x382   : > { %v1217_v46 = vsel %vm577_vm1, 0.0, %v1216_v40  ;;  %v1220_v47 = vrot.slane %v1211_v39, 4  ;;  %v1223_v48 = vsel %vm577_vm1, 0.0, %v1222_v42  ;;  %v1228_v49 = vperm.slane %v1224_v43, %v2245_v22 }
 0x383   : > { %v1240_v50 = vrot.slane %v1223_v48, 4  ;;  %v1230_v51 = vsel %vm577_vm1, %v1229_v45, %v1217_v46  ;;  %v1235_v53 = vsel %vm577_vm1, %v1222_v42, %v1211_v39 }
 0x384   : > { %v1221_v56 = vsel %vm577_vm1, 0.0, %v1220_v47  ;;  %v1234_v57 = vperm.slane %v1230_v51, %v2245_v22  ;;  %v1239_v58 = vperm.slane %v1235_v53, %v2245_v22  ;;  %v1248_v59 = vrot.slane %v1228_v49, 4 }
 0x385   : > { %v1241_v60 = vsel %vm577_vm1, %v1240_v50, %v1221_v56 }
 0x386   : > { %v1245_v61 = vperm.slane %v1241_v60, %v2245_v22  ;;  %v1249_v62 = vsel %vm577_vm1, %v1234_v57, %v1248_v59  ;;  %v1260_v63 = vrot.slane %v1239_v58, 4  ;;  %v1246_v0 = vrot.slane %v1234_v57, 4 }
 0x387   : > { %v1257_v1 = vperm.slane %v1249_v62, %v2254_v35 }
 0x388   : > { %v1261_v2 = vsel %vm577_vm1, %v1245_v61, %v1260_v63  ;;  %v1247_v3 = vsel %vm577_vm1, %v1246_v0, %v1228_v49  ;;  %v1258_v4 = vrot.slane %v1245_v61, 4 }
 0x389   : > { %v1269_v5 = vperm.slane %v1261_v2, %v2254_v35  ;;  %v1276_v6 = vrot.slane %v1257_v1, 4  ;;  %v1253_v7 = vperm.slane %v1247_v3, %v2254_v35 }
 0x38a   : > { %v1259_v8 = vsel %vm577_vm1, %v1258_v4, %v1239_v58 }
 0x38b   : > { %v1277_v22 = vsel %vm577_vm1, %v1269_v5, %v1276_v6  ;;  %v1274_v9 = vrot.slane %v1269_v5, 4  ;;  %v1265_v10 = vperm.slane %v1259_v8, %v2254_v35  ;;  %v1272_v11 = vrot.slane %v1253_v7, 4  ;;  %v1295_v35 = vld [vmem:[#allocation13] sm:$0xff] }
 0x38c   : > { %1287 = vrot.lane.b32.xlu2 %v1277_v22, %s2005_s5  ;;  %1321 = vmatpush.msra.mxu2 %v1295_v35 }
 0x38d   : > { %v1275_v12 = vsel %vm577_vm1, %v1274_v9, %v1257_v1  ;;  %v1270_v44 = vrot.slane %v1265_v10, 4  ;;  %v1273_v13 = vsel %vm577_vm1, %v1265_v10, %v1272_v11 }
 0x38e   : > { %1283 = vrot.lane.b32.xlu0 %v1275_v12, %s2006_s24  ;;  %1279 = vrot.lane.b32.xlu1 %v1273_v13, %s2007_s9 }
 0x38f   : > { %v1271_v14 = vsel %vm577_vm1, %v1270_v44, %v1253_v7 }
 0x3e6   : > { %v1288_v55 = vpop.permute.xlu2 %1287 }
 0x400   : > { %v1284_v17 = vpop.permute.xlu0 %1283  ;;  %v1280_v18 = vpop.permute.xlu1 %1279 }
 0x401   : > { %v1290_v19 = vsel %vm927_vm2, %v1271_v14, %v1280_v18 }
 0x402   : > { %v1292_v20 = vsel %vm1291_vm3, %v1290_v19, %v1284_v17 }
 0x403   : > { %v1294_v54 = vsel %vm1293_vm4, %v1292_v20, %v1288_v55 }
 0x404   : > { %1543 = vmatmul.msk.f32.vlgmr.msra.gmra.mxu2 %vm486_vm0, %v1294_v54 }
 0x487   : > { %v1323_v23 = vpop.f32.mrf.mxu2 }
 0x488   : > { %v1324_v24 = vadd.f32 %v1671_v21, %v1323_v23 }
 0x48a   : > { %1326 = vst.msk [vmem:[%s480_s12] sm:$0xff] %vm486_vm0, %v1324_v24 }
 0x48b   : > { %1925 = shalt.err (!%p1922_p13)
}
 0x48c   : > { %1570 = dma.vmem_to_hbm [thread:$0]  (%p2141_p2), %s1342_s14, 128, %s1344_s18, %s1328_s6  }
 0x48d PF: > { %s2542_s11 = sld [smem:[#allocation21_spill]]  ;;  %s1355_s17 = sand.u32 1, %s1972_s27  }
 0x48e   : > { %p1596_p0 = pnand %p1512_p6, %p2148_p7  ;;  %s1356_s16 = scalar_lea.sflag [#allocation4], %s1355_s17 }
 0x490   : > { %p1597_p4 = pneg %p1596_p0 }
 0x492   : > { %1967 = dma.done.wait (%p1597_p4), %s1356_s16, 128  }
 0x493   : > { %1969 = vsyncadd (%p1597_p4), %s1356_s16, 4294967168  ;;  %s29_s10 = sadd.s32 1, %s2542_s11   ;;  %s2543_s5 = sld [smem:[#allocation23_spill]] }
 0x494   : > { %p26_p9 = scmp.ge.s32.totalorder %s29_s10, 4   ;;  %s2544_s30 = sld [smem:[#allocation20_spill]] }
 0x495   : > { %s2545_s9 = sld [smem:[#allocation22_spill]]  ;;  %s2546_s27 = smov %s1976_s28 }
 0x496   : > { %s2547_s28 = smov %s1980_s29  ;;  %28 = sbr.rel (!%p26_p9) target bundleno = 17 (0x11), region = 137 }
 0x499   : > { %s2548_s29 = smov %s2543_s5 }
 0x49b   :  { %1362 = vsyncpa [#allocation3], 1 }
 0x49c   :  { %1364 = vsyncpa [#allocation3 + $0x1], 1 }
 0x49d   :  { %1365 = vsyncpa [#allocation6], 1 }
 0x49e   :  { %1367 = vsyncpa [#allocation6 + $0x1], 1 }
 0x49f   :  { %1368 = vsyncpa [#allocation9], 1 }
 0x4a0   :  { %1369 = vsyncpa [#allocation12], 1 }
 0x4a1   :  { %1370 = vsyncpa [#allocation4], 1 }
 0x4a2   :  { %1372 = vsyncpa [#allocation4 + $0x1], 1 }

</bundles_post_ra>
